<compile_context>
chip_gen: v5e
topology: v5e:2x2
jax: 0.10.0
libtpu: 0.0.40
codegen_flags: <defaults>
</compile_context>

<pallas_src>
from typing import Optional

import jax
import jax.numpy as jnp
from jax.experimental import pallas as pl
from jax.experimental.pallas import tpu as pltpu


# ----------------------------------------------------------------------------
# Pallas kernel: single HBM -> HBM DMA copy of the whole array.
# Both refs live in pl.ANY (left in HBM); no vreg round-trip, no VMEM staging.
# ----------------------------------------------------------------------------
def _dma_copy_kernel(x_hbm, o_hbm, copy_sem):
    cp = pltpu.make_async_copy(x_hbm, o_hbm, copy_sem)
    cp.start()
    cp.wait()


def _dma_copy(x: jax.Array) -> jax.Array:
    """Materialize a copy of `x` via a single DMA (no compute units touched)."""
    return pl.pallas_call(
        _dma_copy_kernel,
        out_shape=jax.ShapeDtypeStruct(x.shape, x.dtype),
        in_specs=[pl.BlockSpec(memory_space=pl.ANY)],
        out_specs=pl.BlockSpec(memory_space=pl.ANY),
        scratch_shapes=[pltpu.SemaphoreType.DMA],
    )(x)


def snake_passthrough_pallas(x: jax.Array, *, materialize_copy: bool = False) -> jax.Array:
    """Identity pass-through.

    The reference forward performs no math, so the cheapest correct behavior
    is to return `x` unchanged (zero HBM traffic).  If a physically separate
    output buffer is required (e.g. for donation/aliasing downstream), set
    `materialize_copy=True` to route it through the DMA-copy Pallas kernel.
    """
    if not materialize_copy:
        return x
    return _dma_copy(x)


# ----------------------------------------------------------------------------
# SnakeNetwork — JAX port with semantics matching the PyTorch module exactly.
# ----------------------------------------------------------------------------
class SnakeNetwork:
    def __init__(self, input_dim, loss_fn, activation_fn):
        # Mirrors the PyTorch __init__: no parameters are created; the loss
        # function is instantiated and the activation stored (both unused by
        # the stub forward).
        self.activation_fn = activation_fn
        self.loss_fn = loss_fn()
        self.input_dim = input_dim

    def forward(self, x: jax.Array) -> Optional[jax.Array]:
        # TODO(synk): reference forward is unimplemented upstream; it only
        # prints a message and returns None.  Reproduced verbatim.
        print("Not implemented yet!")
        return None

    def __call__(self, x: jax.Array) -> Optional[jax.Array]:
        return self.forward(x)


if __name__ == "__main__":
    key = jax.random.PRNGKey(0)
    # Small NCHW input consistent with an image-style input_dim.
    x = jax.random.normal(key, (2, 4, 16, 16), dtype=jnp.float32)

    # Deterministic "parameter" setup mirroring the PyTorch constructor args.
    def dummy_loss_fn():
        return lambda pred, target: jnp.mean((pred - target) ** 2)

    net = SnakeNetwork(input_dim=(4, 16, 16),
                       loss_fn=dummy_loss_fn,
                       activation_fn=jnp.tanh)

    # Exact reference semantics: prints the message, returns None.
    out = net(x)
    assert out is None

    # Default path: zero-cost identity (no dispatch at all).
    y0 = snake_passthrough_pallas(x)
    assert y0.shape == x.shape and y0.dtype == x.dtype

    # Exercise the Pallas DMA-copy kernel once and verify bit-exactness.
    copy_fn = jax.jit(lambda a: snake_passthrough_pallas(a, materialize_copy=True))
    y = jax.block_until_ready(copy_fn(x))
    assert y.shape == x.shape and y.dtype == x.dtype
    assert bool(jnp.array_equal(y, x))

    print("KERNEL_OK")
</pallas_src>

<mosaic_0001>
module attributes {stable_mosaic.version = 11 : i64} {
  func.func @_dma_copy_kernel(%arg0: memref<2x4x16x16xf32, #tpu.memory_space<any>>, %arg1: memref<2x4x16x16xf32, #tpu.memory_space<any>>, %arg2: memref<!tpu.dma_semaphore, #tpu.memory_space<semaphore_mem>>) attributes {dimension_semantics = [], scalar_prefetch = 0 : i64, scratch_operands = 1 : i64, tpu.core_type = #tpu.core_type<tc>} {
    tpu.enqueue_dma source(%arg0 : memref<2x4x16x16xf32, #tpu.memory_space<any>>) target(%arg1 : memref<2x4x16x16xf32, #tpu.memory_space<any>>) target_semaphore(%arg2 : memref<!tpu.dma_semaphore, #tpu.memory_space<semaphore_mem>>)
    tpu.wait_dma2 semaphore(%arg2 : memref<!tpu.dma_semaphore, #tpu.memory_space<semaphore_mem>>) src(%arg0 : memref<2x4x16x16xf32, #tpu.memory_space<any>>) dst(%arg1 : memref<2x4x16x16xf32, #tpu.memory_space<any>>)
    return
  }
}

</mosaic_0001>

<bundles_post_ra>
// kernel: _lambda_.1
= control target key start
LH: loop header
LB: loop body
LE: loop exit
PB: predicated region body
PF: predicated region fallthrough
CT: control target
= control target key end

     0   :  { %s34_s12 = smov [#allocation2]   ;;  %s35_s13 = smov [#allocation3]   ;;  %s53_s0 = inlined_call_operand.hbm [shape: f32[2,4,16,16], index: 0, kind: input, shape index: {}]   ;;  %s54_s1 = inlined_call_operand.hbm [shape: f32[2,4,16,16], index: 1, kind: output, shape index: {}]  }
   0x1   :  { %s10_s8 = sshll.u32 %s53_s0, 4  ;;  %s12_s11 = sshll.u32 %s54_s1, 4  ;;  %s11_s8 = int_to_ptr.hbm [resolvable:$true] %s10_s8  ;;  %s13_s11 = int_to_ptr.hbm [resolvable:$true] %s12_s11 }
   0x2   :  { %s36_s14 = smov 0  }
   0x3   :  { %16 = dma.general %s11_s8, 2048, %s13_s11, %s34_s12, %s35_s13, [#allocation4], %s36_s14, 0  }
   0x4   :  { %32 = dma.done.wait [#allocation2], 2048 }
   0x5   :  { %33 = vsyncadd [#allocation2], 4294965248 }
   0x6   :  { %22 = vsyncmov [#allocation2] }
   0x9   :  { %s23_s15 = vpop.sfrf %22 }
   0xa   :  { %p28_p0 = scmp.ne.s32.totalorder %s23_s15, 0 }
   0xc   :  { %27 = shalt.err (%p28_p0)  }

</bundles_post_ra>
